<compile_context>
chip_gen: v7x
topology: tpu7x:2x2x1
jax: 0.10.0
libtpu: 0.0.40
codegen_flags: <defaults>
</compile_context>

<pallas_src>
import jax
import jax.numpy as jnp
from jax.experimental import pallas as pl
from jax.experimental.pallas import tpu as pltpu

F_PAD = 128            # lane-dense padded feature width (input/hidden/output)
BIAS_ROWS = 8          # sublane-padded rows per bias in the bias slab
SMALL_MAX_NPAD = 1024  # fast path (single step, resident A) up to this n_pad


def _round_up(x, m):
    return ((x + m - 1) // m) * m


# --------------------------- small-graph kernel ------------------------------
def fused_gcn_small_kernel(a_ref, x_ref, w_ref, b_ref, o_ref):
    """Whole 3-layer GCN in ONE grid step (A resident in VMEM, layers unrolled).

    Big propagation dots use bf16 MXU inputs with f32 accumulation; the cheap
    (A@H)@W epilogue, bias add and activations stay in f32.
    """
    a = a_ref[...]                                       # (n_pad, n_pad) bf16
    h = x_ref[...]                                       # (n_pad, 128)  bf16
    for layer in range(3):                               # static unroll
        w = w_ref[layer * F_PAD:(layer + 1) * F_PAD, :]           # (128,128) f32
        b = b_ref[layer * BIAS_ROWS:layer * BIAS_ROWS + 1, :]     # (1,128)   f32
        ah = jnp.dot(a, h, preferred_element_type=jnp.float32)    # bf16 MXU
        logits = jnp.dot(ah, w, preferred_element_type=jnp.float32) + b
        if layer < 2:
            h = jnp.maximum(logits, 0.0).astype(jnp.bfloat16)
        else:
            o_ref[...] = jax.nn.sigmoid(logits).astype(o_ref.dtype)


# --------------------------- tiled large-graph kernel ------------------------
def fused_gcn_tiled_kernel(a_ref, x_ref, w_ref, b_ref, o_ref, acc_ref, h_ref):
    """Fused 3-layer GCN.  Grid = (layer l, A row tile i, A col/red tile k).

    Per layer:  H_l = act_l( (A @ H_{l-1}) @ W_l + b_l )
    Layer 0 reads the streamed X tile directly; layers 1/2 read the persistent
    bf16 VMEM ping-pong scratch (slot 0 / slot 1).  A is streamed as bf16
    (tm,tk) tiles; accumulation is f32.
    """
    layer = pl.program_id(0)
    i = pl.program_id(1)
    k = pl.program_id(2)
    nk = pl.num_programs(2)

    tm, tk = a_ref.shape
    n_pad = h_ref.shape[0] // 2

    # Zero the f32 accumulator at the start of every reduction.
    @pl.when(k == 0)
    def _():
        acc_ref[...] = jnp.zeros_like(acc_ref)

    # acc += A[i, k] @ H_prev[k]      (bf16 MXU inputs, f32 accumulate)
    @pl.when(layer == 0)
    def _():
        acc_ref[...] += jnp.dot(a_ref[...], x_ref[...],
                                preferred_element_type=jnp.float32)

    @pl.when(layer > 0)
    def _():
        src = (layer + 1) % 2            # layer 1 reads slot 0, layer 2 slot 1
        r0 = pl.multiple_of(src * n_pad + k * tk, tk)
        acc_ref[...] += jnp.dot(a_ref[...], h_ref[pl.ds(r0, tk), :],
                                preferred_element_type=jnp.float32)

    # Finalize this row tile: f32 feature transform, bias, per-layer act/store.
    @pl.when(k == nk - 1)
    def _():
        wrow = pl.multiple_of(layer * F_PAD, F_PAD)
        brow = pl.multiple_of(layer * BIAS_ROWS, BIAS_ROWS)
        w = w_ref[pl.ds(wrow, F_PAD), :]                 # (128,128) f32
        b = b_ref[pl.ds(brow, 1), :]                     # (1,128)   f32
        logits = jnp.dot(acc_ref[...], w,
                         preferred_element_type=jnp.float32) + b

        @pl.when(layer < 2)
        def _():
            d0 = pl.multiple_of((layer % 2) * n_pad + i * tm, tm)
            h_ref[pl.ds(d0, tm), :] = jnp.maximum(logits, 0.0).astype(h_ref.dtype)

        @pl.when(layer == 2)
        def _():
            o_ref[...] = jax.nn.sigmoid(logits).astype(o_ref.dtype)


# ------------------------------ wrapper ---------------------------------------
def pack_weight_slabs(params):
    """Pack W1..3 (padded to 128x128) and b1..3 into f32 slabs."""
    w_rows, b_rows = [], []
    for w, b in params:
        wp = jnp.zeros((F_PAD, F_PAD), jnp.float32)
        wp = wp.at[:w.shape[0], :w.shape[1]].set(w)
        bp = jnp.zeros((BIAS_ROWS, F_PAD), jnp.float32)
        bp = bp.at[0, :b.shape[0]].set(b)
        w_rows.append(wp)
        b_rows.append(bp)
    return (jnp.concatenate(w_rows, axis=0),    # (3*128, 128) f32
            jnp.concatenate(b_rows, axis=0))    # (3*8,   128) f32


def complex_gcn_forward(a_hat, x, params):
    n, in_dim = x.shape
    out_dim = params[2][0].shape[1]
    wslab, bslab = pack_weight_slabs(params)

    small = n <= SMALL_MAX_NPAD
    if small:
        n_pad = _round_up(n, 128)
        tm, tk = n_pad, n_pad
    else:
        tm, tk = 512, 1024                  # large streamed A tiles
        n_pad = _round_up(n, tk)            # divisible by both tm and tk

    # Operands built directly in their kernel dtypes (no f32 temp + cast pass).
    a_p = jnp.zeros((n_pad, n_pad), jnp.bfloat16).at[:n, :n].set(
        a_hat.astype(jnp.bfloat16))
    x_p = jnp.zeros((n_pad, F_PAD), jnp.bfloat16).at[:n, :in_dim].set(
        x.astype(jnp.bfloat16))

    flops = 3 * (2 * n_pad * n_pad * F_PAD + 2 * n_pad * F_PAD * F_PAD)
    trans = n_pad * F_PAD

    if small:
        # ---- fast path: one grid step, A resident, layers unrolled ----------
        vmem_need = (2 * a_p.size * 2 + 2 * x_p.size * 2
                     + 2 * wslab.size * 4 + 2 * bslab.size * 4
                     + 2 * n_pad * F_PAD * 4
                     + 6 * n_pad * F_PAD * 4)            # intermediates headroom
        out_padded = pl.pallas_call(
            fused_gcn_small_kernel,
            out_shape=jax.ShapeDtypeStruct((n_pad, F_PAD), jnp.float32),
            grid=(1,),
            in_specs=[
                pl.BlockSpec((n_pad, n_pad), lambda s: (0, 0)),          # A (bf16)
                pl.BlockSpec((n_pad, F_PAD), lambda s: (0, 0)),          # X (bf16)
                pl.BlockSpec((3 * F_PAD, F_PAD), lambda s: (0, 0)),      # W slab
                pl.BlockSpec((3 * BIAS_ROWS, F_PAD), lambda s: (0, 0)),  # b slab
            ],
            out_specs=pl.BlockSpec((n_pad, F_PAD), lambda s: (0, 0)),
            compiler_params=pltpu.CompilerParams(
                dimension_semantics=("arbitrary",),
                vmem_limit_bytes=min(int(vmem_need) + (16 << 20), 64 << 20)),
            cost_estimate=pl.CostEstimate(
                flops=flops, transcendentals=trans,
                bytes_accessed=int(a_p.size * 2 + x_p.size * 2 + wslab.size * 4
                                   + bslab.size * 4 + n_pad * F_PAD * 4)),
        )(a_p, x_p, wslab, bslab)
    else:
        # ---- tiled path: grid = (3 layers, row tiles, reduction tiles) ------
        grid = (3, n_pad // tm, n_pad // tk)
        vmem_need = (2 * tm * tk * 2                  # A tiles (double buf, bf16)
                     + 2 * tk * F_PAD * 2             # X tiles (double buf, bf16)
                     + 2 * wslab.size * 4 + 2 * bslab.size * 4
                     + 2 * tm * F_PAD * 4             # output blocks
                     + tm * F_PAD * 4                 # f32 accumulator
                     + 2 * n_pad * F_PAD * 2)         # bf16 H ping-pong scratch
        out_padded = pl.pallas_call(
            fused_gcn_tiled_kernel,
            out_shape=jax.ShapeDtypeStruct((n_pad, F_PAD), jnp.float32),
            grid=grid,
            in_specs=[
                pl.BlockSpec((tm, tk), lambda l, i, k: (i, k)),          # A tile
                # X tile: only needed at layer 0; pin to block 0 afterwards so
                # it is not re-DMA'd on layers 1/2.
                pl.BlockSpec((tk, F_PAD),
                             lambda l, i, k: (jnp.where(l == 0, k, 0), 0)),
                pl.BlockSpec((3 * F_PAD, F_PAD), lambda l, i, k: (0, 0)),
                pl.BlockSpec((3 * BIAS_ROWS, F_PAD), lambda l, i, k: (0, 0)),
            ],
            out_specs=pl.BlockSpec((tm, F_PAD), lambda l, i, k: (i, 0)),
            scratch_shapes=[
                pltpu.VMEM((tm, F_PAD), jnp.float32),          # f32 accumulator
                pltpu.VMEM((2 * n_pad, F_PAD), jnp.bfloat16),  # H ping-pong
            ],
            compiler_params=pltpu.CompilerParams(
                # All axes "arbitrary": cross-layer dependency through the H
                # scratch forbids megacore row-splitting in the fused form.
                dimension_semantics=("arbitrary", "arbitrary", "arbitrary"),
                vmem_limit_bytes=min(int(vmem_need * 3 // 2) + (8 << 20),
                                     64 << 20)),
            cost_estimate=pl.CostEstimate(
                flops=flops, transcendentals=trans,
                bytes_accessed=int(3 * a_p.size * 2
                                   + (n_pad // tm) * n_pad * F_PAD * 2
                                   + wslab.size * 4 + bslab.size * 4
                                   + 3 * n_pad * F_PAD * 4)),
        )(a_p, x_p, wslab, bslab)

    return out_padded[:n, :out_dim]


# ------------------------------ JAX glue --------------------------------------
def normalized_adjacency(edge_index, edge_weight, num_nodes):
    """Dense GCN-normalized adjacency with self loops (PyG gcn_norm)."""
    src, dst = edge_index[0], edge_index[1]
    loop = jnp.arange(num_nodes, dtype=src.dtype)
    src = jnp.concatenate([src, loop])
    dst = jnp.concatenate([dst, loop])
    w = jnp.concatenate(
        [edge_weight.astype(jnp.float32), jnp.ones((num_nodes,), jnp.float32)])
    deg = jnp.zeros((num_nodes,), jnp.float32).at[dst].add(w)
    dinv = jnp.where(deg > 0, 1.0 / jnp.sqrt(deg), 0.0)
    norm = dinv[src] * w * dinv[dst]
    a_hat = jnp.zeros((num_nodes, num_nodes), jnp.float32).at[dst, src].add(norm)
    return a_hat


def init_gcn_params(key, input_dim, hidden_dim, output_dim):
    """Deterministic glorot-uniform weights, zero biases (GCNConv defaults)."""
    def glorot(k, fan_in, fan_out):
        limit = jnp.sqrt(6.0 / (fan_in + fan_out))
        return jax.random.uniform(k, (fan_in, fan_out), jnp.float32,
                                  minval=-limit, maxval=limit)
    k1, k2, k3 = jax.random.split(key, 3)
    return (
        (glorot(k1, input_dim, hidden_dim), jnp.zeros((hidden_dim,), jnp.float32)),
        (glorot(k2, hidden_dim, hidden_dim), jnp.zeros((hidden_dim,), jnp.float32)),
        (glorot(k3, hidden_dim, output_dim), jnp.zeros((output_dim,), jnp.float32)),
    )


def reference_forward(a_hat, x, params):
    """Pure-JAX f32 reference of the same forward (for verification)."""
    (w1, b1), (w2, b2), (w3, b3) = params
    h = jnp.maximum(a_hat @ (x @ w1) + b1, 0.0)
    h = jnp.maximum(a_hat @ (h @ w2) + b2, 0.0)
    h = a_hat @ (h @ w3) + b3
    return jax.nn.sigmoid(h)


# -------------------------------- main -----------------------------------------
if __name__ == "__main__":
    key = jax.random.PRNGKey(0)
    k_x, k_w, k_e = jax.random.split(key, 3)

    num_nodes = 8          # graph nodes (rows of sensor_data)
    input_dim = 4          # input feature dim
    hidden_dim = 32        # hidden dim
    output_dim = 2         # labels: ['Negative', 'Positive']

    # deterministic node features
    x = jax.random.normal(k_x, (num_nodes, input_dim), dtype=jnp.float32)

    # deterministic undirected ring graph with symmetric positive edge weights
    i = jnp.arange(num_nodes, dtype=jnp.int32)
    j = (i + 1) % num_nodes
    und_w = jax.random.uniform(k_e, (num_nodes,), jnp.float32,
                               minval=0.5, maxval=1.5)
    edge_index = jnp.stack([jnp.concatenate([i, j]),
                            jnp.concatenate([j, i])], axis=0)   # (2, 2N)
    edge_weight = jnp.concatenate([und_w, und_w])               # (2N,)

    a_hat = normalized_adjacency(edge_index, edge_weight, num_nodes)
    params = init_gcn_params(k_w, input_dim, hidden_dim, output_dim)

    out = complex_gcn_forward(a_hat, x, params)
    out = jax.block_until_ready(out)

    ref = reference_forward(a_hat, x, params)
    assert out.shape == (num_nodes, output_dim)
    # bf16 MXU inputs with f32 accumulation -> loosened tolerance vs f32 ref.
    assert jnp.allclose(out, ref, atol=5e-2, rtol=5e-2), \
        float(jnp.max(jnp.abs(out - ref)))

    print("KERNEL_OK")
</pallas_src>

<mosaic_0001>
module attributes {stable_mosaic.version = 11 : i64} {
  func.func @fused_gcn_small_kernel(%arg0: i32, %arg1: memref<128x128xbf16, #tpu.memory_space<vmem>>, %arg2: memref<128x128xbf16, #tpu.memory_space<vmem>>, %arg3: memref<384x128xf32, #tpu.memory_space<vmem>>, %arg4: memref<24x128xf32, #tpu.memory_space<vmem>>, %arg5: memref<128x128xf32, #tpu.memory_space<vmem>>) attributes {dimension_semantics = [#tpu.dimension_semantics<arbitrary>], iteration_bounds = array<i64: 1>, scalar_prefetch = 0 : i64, scratch_operands = 0 : i64, tpu.core_type = #tpu.core_type<tc>, window_params = [{pipeline_mode = #tpu.pipeline_mode<synchronous>, transform_indices = @transform_0, window_bounds = array<i64: 128, 128>}, {pipeline_mode = #tpu.pipeline_mode<synchronous>, transform_indices = @transform_1, window_bounds = array<i64: 128, 128>}, {pipeline_mode = #tpu.pipeline_mode<synchronous>, transform_indices = @transform_2, window_bounds = array<i64: 384, 128>}, {pipeline_mode = #tpu.pipeline_mode<synchronous>, transform_indices = @transform_3, window_bounds = array<i64: 24, 128>}, {pipeline_mode = #tpu.pipeline_mode<synchronous>, transform_indices = @transform_4, window_bounds = array<i64: 128, 128>}]} {
    %c0 = arith.constant 0 : index
    %c0_0 = arith.constant 0 : index
    %0 = vector.load %arg1[%c0, %c0_0] : memref<128x128xbf16, #tpu.memory_space<vmem>>, vector<128x128xbf16>
    %c0_1 = arith.constant 0 : index
    %c0_2 = arith.constant 0 : index
    %1 = vector.load %arg2[%c0_1, %c0_2] : memref<128x128xbf16, #tpu.memory_space<vmem>>, vector<128x128xbf16>
    %c0_3 = arith.constant 0 : index
    %c0_4 = arith.constant 0 : index
    %2 = vector.load %arg3[%c0_3, %c0_4] : memref<384x128xf32, #tpu.memory_space<vmem>>, vector<128x128xf32>
    %c0_5 = arith.constant 0 : index
    %c0_6 = arith.constant 0 : index
    %3 = vector.load %arg4[%c0_5, %c0_6] : memref<24x128xf32, #tpu.memory_space<vmem>>, vector<1x128xf32>
    %cst = arith.constant dense<0.000000e+00> : vector<128x128xf32>
    %4 = tpu.matmul %0, %1, %cst {dimension_numbers = #tpu.dot_dimension_numbers<[1], [0], [0], [1], [0, 0, 1, 1], [], []>} : vector<128x128xbf16>, vector<128x128xbf16>, vector<128x128xf32> -> vector<128x128xf32>
    %cst_7 = arith.constant dense<0.000000e+00> : vector<128x128xf32>
    %5 = tpu.matmul %4, %2, %cst_7 {dimension_numbers = #tpu.dot_dimension_numbers<[1], [0], [0], [1], [0, 0, 1, 1], [], []>} : vector<128x128xf32>, vector<128x128xf32>, vector<128x128xf32> -> vector<128x128xf32>
    %6 = vector.broadcast %3 : vector<1x128xf32> to vector<128x128xf32>
    %7 = arith.addf %5, %6 : vector<128x128xf32>
    %cst_8 = arith.constant 0.000000e+00 : f32
    %8 = vector.broadcast %cst_8 : f32 to vector<128x128xf32>
    %9 = arith.maximumf %7, %8 : vector<128x128xf32>
    %10 = arith.truncf %9 : vector<128x128xf32> to vector<128x128xbf16>
    %c128 = arith.constant 128 : index
    %c0_9 = arith.constant 0 : index
    %11 = vector.load %arg3[%c128, %c0_9] : memref<384x128xf32, #tpu.memory_space<vmem>>, vector<128x128xf32>
    %c8 = arith.constant 8 : index
    %c0_10 = arith.constant 0 : index
    %12 = vector.load %arg4[%c8, %c0_10] : memref<24x128xf32, #tpu.memory_space<vmem>>, vector<1x128xf32>
    %cst_11 = arith.constant dense<0.000000e+00> : vector<128x128xf32>
    %13 = tpu.matmul %0, %10, %cst_11 {dimension_numbers = #tpu.dot_dimension_numbers<[1], [0], [0], [1], [0, 0, 1, 1], [], []>} : vector<128x128xbf16>, vector<128x128xbf16>, vector<128x128xf32> -> vector<128x128xf32>
    %cst_12 = arith.constant dense<0.000000e+00> : vector<128x128xf32>
    %14 = tpu.matmul %13, %11, %cst_12 {dimension_numbers = #tpu.dot_dimension_numbers<[1], [0], [0], [1], [0, 0, 1, 1], [], []>} : vector<128x128xf32>, vector<128x128xf32>, vector<128x128xf32> -> vector<128x128xf32>
    %15 = vector.broadcast %12 : vector<1x128xf32> to vector<128x128xf32>
    %16 = arith.addf %14, %15 : vector<128x128xf32>
    %cst_13 = arith.constant 0.000000e+00 : f32
    %17 = vector.broadcast %cst_13 : f32 to vector<128x128xf32>
    %18 = arith.maximumf %16, %17 : vector<128x128xf32>
    %19 = arith.truncf %18 : vector<128x128xf32> to vector<128x128xbf16>
    %c256 = arith.constant 256 : index
    %c0_14 = arith.constant 0 : index
    %20 = vector.load %arg3[%c256, %c0_14] : memref<384x128xf32, #tpu.memory_space<vmem>>, vector<128x128xf32>
    %c16 = arith.constant 16 : index
    %c0_15 = arith.constant 0 : index
    %21 = vector.load %arg4[%c16, %c0_15] : memref<24x128xf32, #tpu.memory_space<vmem>>, vector<1x128xf32>
    %cst_16 = arith.constant dense<0.000000e+00> : vector<128x128xf32>
    %22 = tpu.matmul %0, %19, %cst_16 {dimension_numbers = #tpu.dot_dimension_numbers<[1], [0], [0], [1], [0, 0, 1, 1], [], []>} : vector<128x128xbf16>, vector<128x128xbf16>, vector<128x128xf32> -> vector<128x128xf32>
    %cst_17 = arith.constant dense<0.000000e+00> : vector<128x128xf32>
    %23 = tpu.matmul %22, %20, %cst_17 {dimension_numbers = #tpu.dot_dimension_numbers<[1], [0], [0], [1], [0, 0, 1, 1], [], []>} : vector<128x128xf32>, vector<128x128xf32>, vector<128x128xf32> -> vector<128x128xf32>
    %24 = vector.broadcast %21 : vector<1x128xf32> to vector<128x128xf32>
    %25 = arith.addf %23, %24 : vector<128x128xf32>
    %26 = arith.negf %25 : vector<128x128xf32>
    %27 = math.exp %26 : vector<128x128xf32>
    %cst_18 = arith.constant 1.000000e+00 : f32
    %28 = vector.broadcast %cst_18 : f32 to vector<128x128xf32>
    %29 = arith.addf %28, %27 : vector<128x128xf32>
    %30 = arith.divf %28, %29 : vector<128x128xf32>
    %c0_19 = arith.constant 0 : index
    %c0_20 = arith.constant 0 : index
    %31 = vector.load %arg5[%c0_19, %c0_20] : memref<128x128xf32, #tpu.memory_space<vmem>>, vector<128x128xf32>
    tpu.vector_store %arg5[%c0_19, %c0_20], %30 {strides = array<i32>} : memref<128x128xf32, #tpu.memory_space<vmem>>, vector<128x128xf32>,
    return
  }
  func.func @transform_0(%arg0: i32) -> (i32, i32) {
    %c0_i32 = arith.constant 0 : i32
    %c0_i32_0 = arith.constant 0 : i32
    %c0_i32_1 = arith.constant 0 : i32
    return %c0_i32, %c0_i32_0 : i32, i32
  }
  func.func @transform_1(%arg0: i32) -> (i32, i32) {
    %c0_i32 = arith.constant 0 : i32
    %c0_i32_0 = arith.constant 0 : i32
    %c0_i32_1 = arith.constant 0 : i32
    return %c0_i32, %c0_i32_0 : i32, i32
  }
  func.func @transform_2(%arg0: i32) -> (i32, i32) {
    %c0_i32 = arith.constant 0 : i32
    %c0_i32_0 = arith.constant 0 : i32
    %c0_i32_1 = arith.constant 0 : i32
    return %c0_i32, %c0_i32_0 : i32, i32
  }
  func.func @transform_3(%arg0: i32) -> (i32, i32) {
    %c0_i32 = arith.constant 0 : i32
    %c0_i32_0 = arith.constant 0 : i32
    %c0_i32_1 = arith.constant 0 : i32
    return %c0_i32, %c0_i32_0 : i32, i32
  }
  func.func @transform_4(%arg0: i32) -> (i32, i32) {
    %c0_i32 = arith.constant 0 : i32
    %c0_i32_0 = arith.constant 0 : i32
    %c0_i32_1 = arith.constant 0 : i32
    return %c0_i32, %c0_i32_0 : i32, i32
  }
}

</mosaic_0001>

<bundles_post_ra>
// kernel: tpu_custom_call.1
= control target key start
LH: loop header
LB: loop body
LE: loop exit
PB: predicated region body
PF: predicated region fallthrough
CT: control target
= control target key end

     0   :  { %9 = vsyncpa [#allocation3], 0  ;;  %s2120_s0 = inlined_call_operand.hbm [shape: bf16[128,128], index: 0, kind: input, shape index: {}]   ;;  %s2121_s1 = inlined_call_operand.hbm [shape: bf16[128,128], index: 1, kind: input, shape index: {}]   ;;  %s2122_s2 = inlined_call_operand.hbm [shape: f32[384,128], index: 2, kind: input, shape index: {}]   ;;  %s2123_s3 = inlined_call_operand.hbm [shape: f32[24,128], index: 3, kind: input, shape index: {}]   ;;  %s2124_s4 = inlined_call_operand.hbm [shape: f32[128,128], index: 4, kind: output, shape index: {}]  }
   0x1   :  { %10 = vsyncpa [#allocation6], 0 }
   0x2   :  { %11 = vsyncpa [#allocation9], 0 }
   0x3   :  { %12 = vsyncpa [#allocation4], 0  ;;  %s1916_s15 = smov [#allocation5]   ;;  %s1917_s17 = smov [#allocation2]  }
   0x4   :  { %s30_s16 = sshll.u32 %s1916_s15, 4  ;;  %s18_s18 = sshll.u32 %s1917_s17, 4  ;;  %s31_s16 = int_to_ptr.vmem [resolvable:$true] %s30_s16  ;;  %s1950_s18 = int_to_ptr.vmem [resolvable:$true] %s18_s18 }
   0x5   :  { %s1798_s21 = scalar_lea.hbm %s2121_s1, 1024 }
   0x6   :  { %p1799_p0 = scmp.ne.s32.totalorder %s2121_s1, %s1798_s21  ;;  %p1802_p1 = scmp.lt.u32.totalorder %s1798_s21, %s2121_s1 }
   0x8   :  { %p1804_p2 = pnand %p1802_p1, %p1799_p0 }
   0xa   :  { %1807 = shalt.err (!%p1804_p2)
}
   0xb   :  { %s1808_s26 = scalar_lea.vmem %s31_s16, 1024  ;;  %p1813_p4 = scmp.lt.s32.totalorder %s31_s16, %s31_s16 }
   0xc   :  { %p1809_p3 = scmp.ne.s32.totalorder %s31_s16, %s1808_s26  ;;  %p1814_p5 = scmp.lt.s32.totalorder %s1808_s26, %s1808_s26 }
   0xe   :  { %p1815_p6 = por %p1814_p5, %p1813_p4 }
  0x10   :  { %p1816_p7 = pnand %p1815_p6, %p1809_p3 }
  0x12   :  { %1819 = shalt.err (!%p1816_p7)
}
  0x13   :  { %s1918_s27 = smov 64   ;;  %s1919_s28 = smov 4  }
  0x14   :  { %36 = dma.hbm_to_vmem [thread:$0]  %s2121_s1, 1024, %s31_s16, [#allocation6], %s1918_s27, %s1918_s27, %s1919_s28  }
  0x15   :  { %s1820_s7 = scalar_lea.hbm %s2120_s0, 1024 }
  0x16   :  { %p1821_p8 = scmp.ne.s32.totalorder %s2120_s0, %s1820_s7  ;;  %p1824_p9 = scmp.lt.u32.totalorder %s1820_s7, %s2120_s0 }
  0x18   :  { %p1826_p10 = pnand %p1824_p9, %p1821_p8 }
  0x1a   :  { %1829 = shalt.err (!%p1826_p10)
}
  0x1b   :  { %s1830_s12 = scalar_lea.vmem %s1950_s18, 1024  ;;  %p1835_p12 = scmp.lt.s32.totalorder %s1950_s18, %s1950_s18 }
  0x1c   :  { %p1831_p11 = scmp.ne.s32.totalorder %s1950_s18, %s1830_s12  ;;  %p1836_p13 = scmp.lt.s32.totalorder %s1830_s12, %s1830_s12 }
  0x1e   :  { %p1837_p0 = por %p1836_p13, %p1835_p12 }
  0x20   :  { %p1838_p1 = pnand %p1837_p0, %p1831_p11 }
  0x22   :  { %1841 = shalt.err (!%p1838_p1)
}
  0x23   :  { %24 = dma.hbm_to_vmem [thread:$0]  %s2120_s0, 1024, %s1950_s18, [#allocation3], %s1918_s27, %s1918_s27, %s1919_s28  }
  0x24   :  { %s1920_s14 = smov [#allocation7]   ;;  %s1842_s19 = scalar_lea.hbm %s2122_s2, 6144 }
  0x25   :  { %s42_s15 = sshll.u32 %s1920_s14, 4  ;;  %p1843_p2 = scmp.ne.s32.totalorder %s2122_s2, %s1842_s19  ;;  %s43_s15 = int_to_ptr.vmem [resolvable:$true] %s42_s15 }
  0x26   :  { %p1846_p3 = scmp.lt.u32.totalorder %s1842_s19, %s2122_s2 }
  0x28   :  { %p1848_p4 = pnand %p1846_p3, %p1843_p2 }
  0x2a   :  { %1851 = shalt.err (!%p1848_p4)
}
  0x2b   :  { %s1852_s24 = scalar_lea.vmem %s43_s15, 6144  ;;  %p1857_p6 = scmp.lt.s32.totalorder %s43_s15, %s43_s15 }
  0x2c   :  { %p1853_p5 = scmp.ne.s32.totalorder %s43_s15, %s1852_s24  ;;  %p1858_p7 = scmp.lt.s32.totalorder %s1852_s24, %s1852_s24 }
  0x2e   :  { %p1859_p8 = por %p1858_p7, %p1857_p6 }
  0x30   :  { %p1860_p9 = pnand %p1859_p8, %p1853_p5 }
  0x32   :  { %1863 = shalt.err (!%p1860_p9)
}
  0x33   :  { %s1921_s0 = smov 128   ;;  %s1922_s18 = smov 8  }
  0x34   :  { %48 = dma.hbm_to_vmem [thread:$0]  %s2122_s2, 6144, %s43_s15, [#allocation6], %s1921_s0, %s1921_s0, %s1922_s18  }
  0x35   :  { %s1923_s27 = smov [#allocation8]   ;;  %s1864_s5 = scalar_lea.hbm %s2123_s3, 384 }
  0x36   :  { %s54_s28 = sshll.u32 %s1923_s27, 4  ;;  %p1865_p10 = scmp.ne.s32.totalorder %s2123_s3, %s1864_s5  ;;  %s55_s28 = int_to_ptr.vmem [resolvable:$true] %s54_s28 }
  0x37   :  { %p1868_p11 = scmp.lt.u32.totalorder %s1864_s5, %s2123_s3 }
  0x39   :  { %p1870_p12 = pnand %p1868_p11, %p1865_p10 }
  0x3b   :  { %1873 = shalt.err (!%p1870_p12)
}
  0x3c   :  { %s1874_s10 = scalar_lea.vmem %s55_s28, 384  ;;  %p1879_p0 = scmp.lt.s32.totalorder %s55_s28, %s55_s28 }
  0x3d   :  { %p1875_p13 = scmp.ne.s32.totalorder %s55_s28, %s1874_s10  ;;  %p1880_p1 = scmp.lt.s32.totalorder %s1874_s10, %s1874_s10 }
  0x3f   :  { %p1881_p2 = por %p1880_p1, %p1879_p0 }
  0x41   :  { %p1882_p3 = pnand %p1881_p2, %p1875_p13 }
  0x43   :  { %1885 = shalt.err (!%p1882_p3)
}
  0x44   :  { %60 = dma.hbm_to_vmem [thread:$0]  %s2123_s3, 384, %s55_s28, [#allocation9], %s1921_s0, %s1921_s0, %s1922_s18  }
  0x45   :  { %1908 = dma.done.wait [#allocation3], 1024  }
  0x46   :  { %1909 = vsyncadd [#allocation3], 4294966272 }
  0x47   :  { %1910 = dma.done.wait [#allocation6], 7168  }
  0x48   :  { %1911 = vsyncadd [#allocation6], 4294960128 }
  0x49   :  { %1912 = dma.done.wait [#allocation9], 384  }
  0x4a   :  { %1913 = vsyncadd [#allocation9], 4294966912  ;;  %v1718_v0 = vld [vmem:[#allocation5] sm:$0xff]   ;;  %v1719_v1 = vld [vmem:[#allocation5 + $0x8] sm:$0xff]   ;;  %s1924_s3 = smov [#allocation10]  }
  0x4b   :  { %1349 = vmatprep.subr.bf16.mxu0 %v1718_v0  ;;  %v1720_v2 = vld [vmem:[#allocation5 + $0x10] sm:$0xff]   ;;  %v1721_v3 = vld [vmem:[#allocation5 + $0x18] sm:$0xff]   ;;  %v2011_v4 = vld [vmem:[#allocation2] sm:$0xff]   ;;  %s1156_s12 = sshll.u32 %s1924_s3, 4  ;;  %s1157_s12 = int_to_ptr.vmem [resolvable:$true] %s1156_s12 }
  0x4c   :  { %1350 = vmatpush3.bf16.msra.mxu0 %v1718_v0  ;;  %1365 = vmatprep.mubr.bf16.mxu0 %v2011_v4  ;;  %v1722_v5 = vld [vmem:[#allocation5 + $0x20] sm:$0xff]   ;;  %v1723_v6 = vld [vmem:[#allocation5 + $0x28] sm:$0xff]   ;;  %v108_v9 = vld [vmem:[#allocation7 + $0x10] sm:$0xff]  ;;  %s1886_s1 = scalar_lea.vmem %s1157_s12, 2048  ;;  %p1891_p5 = scmp.lt.s32.totalorder %s1157_s12, %s1157_s12 }
  0x4d   :  { %1351 = vmatprep.subr.bf16.mxu0 %v1719_v1  ;;  %v106_v7 = vld [vmem:[#allocation7] sm:$0xff]  ;;  %v107_v8 = vld [vmem:[#allocation7 + $0x8] sm:$0xff]  ;;  %v109_v11 = vld [vmem:[#allocation7 + $0x18] sm:$0xff]  ;;  %p1887_p4 = scmp.ne.s32.totalorder %s1157_s12, %s1886_s1  ;;  %p1892_p6 = scmp.lt.s32.totalorder %s1886_s1, %s1886_s1 }
  0x4e   :  { %v1613_v10 = vpack.c.bf16 %v107_v8, %v106_v7  ;;  %v1617_v12 = vpack.c.bf16 %v109_v11, %v108_v9  ;;  %v110_v13 = vld [vmem:[#allocation7 + $0x20] sm:$0xff]  ;;  %v111_v14 = vld [vmem:[#allocation7 + $0x28] sm:$0xff]  ;;  %v1724_v15 = vld [vmem:[#allocation5 + $0x30] sm:$0xff]  }
  0x4f   :  { %v1621_v16 = vpack.c.bf16 %v111_v14, %v110_v13  ;;  %v112_v17 = vld [vmem:[#allocation7 + $0x30] sm:$0xff]  ;;  %v113_v18 = vld [vmem:[#allocation7 + $0x38] sm:$0xff]  ;;  %v114_v21 = vld [vmem:[#allocation7 + $0x40] sm:$0xff]  ;;  %p1893_p7 = por %p1892_p6, %p1891_p5 }
  0x50   :  { %1352 = vmatpush3.bf16.msra.mxu0 %v1719_v1  ;;  %1614 = vmatprep.subr.bf16.mxu1 %v1613_v10  ;;  %v1725_v19 = vld [vmem:[#allocation5 + $0x38] sm:$0xff]   ;;  %v1625_v20 = vpack.c.bf16 %v113_v18, %v112_v17  ;;  %v115_v22 = vld [vmem:[#allocation7 + $0x48] sm:$0xff]  ;;  %v116_v25 = vld [vmem:[#allocation7 + $0x50] sm:$0xff] }
  0x51   :  { %1353 = vmatprep.subr.bf16.mxu0 %v1720_v2  ;;  %1616 = vmatpush3.bf16.msra.mxu1 %v1613_v10  ;;  %v1629_v23 = vpack.c.bf16 %v115_v22, %v114_v21  ;;  %v2014_v24 = vld [vmem:[#allocation2 + $0x8] sm:$0xff]   ;;  %v117_v26 = vld [vmem:[#allocation7 + $0x58] sm:$0xff]  ;;  %v2016_v27 = vld [vmem:[#allocation2 + $0x10] sm:$0xff]   ;;  %p1894_p8 = pnand %p1893_p7, %p1887_p4 }
  0x52   :  { %1618 = vmatprep.subr.bf16.mxu1 %v1617_v12  ;;  %v1633_v28 = vpack.c.bf16 %v117_v26, %v116_v25  ;;  %v118_v29 = vld [vmem:[#allocation7 + $0x60] sm:$0xff]  ;;  %v119_v30 = vld [vmem:[#allocation7 + $0x68] sm:$0xff]  ;;  %v2020_v32 = vld [vmem:[#allocation2 + $0x18] sm:$0xff]  }
  0x53   :  { %v1637_v31 = vpack.c.bf16 %v119_v30, %v118_v29  ;;  %v2022_v33 = vld [vmem:[#allocation2 + $0x20] sm:$0xff]   ;;  %v2026_v34 = vld [vmem:[#allocation2 + $0x28] sm:$0xff]   ;;  %v2028_v35 = vld [vmem:[#allocation2 + $0x30] sm:$0xff]  }
  0x54   :  { %1354 = vmatpush3.bf16.msra.mxu0 %v1720_v2  ;;  %v2032_v36 = vld [vmem:[#allocation2 + $0x38] sm:$0xff]   ;;  %v120_v37 = vld [vmem:[#allocation7 + $0x70] sm:$0xff]  ;;  %v489_v56 = vld [vmem:[#allocation7 + $0x80] sm:$0xff] }
  0x55   :  { %1355 = vmatprep.subr.bf16.mxu0 %v1721_v3  ;;  %1620 = vmatpush3.bf16.msra.mxu1 %v1617_v12  ;;  %v121_v38 = vld [vmem:[#allocation7 + $0x78] sm:$0xff]  ;;  %v490_v57 = vld [vmem:[#allocation7 + $0x88] sm:$0xff]  ;;  %v491_v58 = vld [vmem:[#allocation7 + $0x90] sm:$0xff] }
  0x56   :  { %1622 = vmatprep.subr.bf16.mxu1 %v1621_v16  ;;  %v1641_v39 = vpack.c.bf16 %v121_v38, %v120_v37  ;;  %v1645_v59 = vpack.c.bf16 %v490_v57, %v489_v56  ;;  %v492_v60 = vld [vmem:[#allocation7 + $0x98] sm:$0xff]  ;;  %v493_v62 = vld [vmem:[#allocation7 + $0xa0] sm:$0xff]  ;;  %v494_v63 = vld [vmem:[#allocation7 + $0xa8] sm:$0xff] }
  0x57   :  { %v1649_v61 = vpack.c.bf16 %v492_v60, %v491_v58  ;;  %v1653_v0 = vpack.c.bf16 %v494_v63, %v493_v62  ;;  %v495_v1 = vld [vmem:[#allocation7 + $0xb0] sm:$0xff]  ;;  %v496_v2 = vld [vmem:[#allocation7 + $0xb8] sm:$0xff]  ;;  %v501_v11 = vld [vmem:[#allocation7 + $0xe0] sm:$0xff] }
  0x58   :  { %1356 = vmatpush3.bf16.msra.mxu0 %v1721_v3  ;;  %v1657_v3 = vpack.c.bf16 %v496_v2, %v495_v1  ;;  %v499_v8 = vld [vmem:[#allocation7 + $0xd0] sm:$0xff]  ;;  %v500_v9 = vld [vmem:[#allocation7 + $0xd8] sm:$0xff]  ;;  %v502_v12 = vld [vmem:[#allocation7 + $0xe8] sm:$0xff] }
  0x59   :  { %1357 = vmatprep.subr.bf16.mxu0 %v1722_v5  ;;  %1624 = vmatpush3.bf16.msra.mxu1 %v1621_v16  ;;  %v1665_v10 = vpack.c.bf16 %v500_v9, %v499_v8  ;;  %v1669_v13 = vpack.c.bf16 %v502_v12, %v501_v11  ;;  %v2036_v14 = vld [vmem:[#allocation8] ss:$0 sm:$0xff] }
  0x5a   :  { %1626 = vmatprep.subr.bf16.mxu1 %v1625_v20 }
  0x5c   :  { %1358 = vmatpush3.bf16.msra.mxu0 %v1722_v5  ;;  %v497_v5 = vld [vmem:[#allocation7 + $0xc0] sm:$0xff] }
  0x5d   :  { %1359 = vmatprep.subr.bf16.mxu0 %v1723_v6  ;;  %1628 = vmatpush3.bf16.msra.mxu1 %v1625_v20 }
  0x5e   :  { %1630 = vmatprep.subr.bf16.mxu1 %v1629_v23 }
  0x60   :  { %1360 = vmatpush3.bf16.msra.mxu0 %v1723_v6  ;;  %v498_v6 = vld [vmem:[#allocation7 + $0xc8] sm:$0xff] }
  0x61   :  { %1361 = vmatprep.subr.bf16.mxu0 %v1724_v15  ;;  %1632 = vmatpush3.bf16.msra.mxu1 %v1629_v23  ;;  %v1661_v7 = vpack.c.bf16 %v498_v6, %v497_v5 }
  0x62   :  { %1634 = vmatprep.subr.bf16.mxu1 %v1633_v28 }
  0x64   :  { %1362 = vmatpush3.bf16.msra.mxu0 %v1724_v15 }
  0x65   :  { %1363 = vmatprep.subr.bf16.mxu0 %v1725_v19  ;;  %1636 = vmatpush3.bf16.msra.mxu1 %v1633_v28 }
  0x66   :  { %1638 = vmatprep.subr.bf16.mxu1 %v1637_v31 }
  0x68   :  { %1364 = vmatpush3.bf16.msra.mxu0 %v1725_v19 }
  0x69   :  { %1640 = vmatpush3.bf16.msra.mxu1 %v1637_v31 }
  0x6a   :  { %1642 = vmatprep.subr.bf16.mxu1 %v1641_v39 }
  0x6b   :  { %1366 = vmatmul.mubr.bf16.vlgmr.msra.gmra.mrb[0].mxu0 %v2014_v24 }
  0x6c   :  { %1369 = vmatprep.mubr.bf16.mxu0 %v2016_v27 }
  0x6d   :  { %1644 = vmatpush3.bf16.msra.mxu1 %v1641_v39 }
  0x6e   :  { %1646 = vmatprep.subr.bf16.mxu1 %v1645_v59 }
  0x73   :  { %1370 = vmatmul.mubr.bf16.gmra.mrb[4].mxu0 %v2020_v32 }
  0x74   :  { %1373 = vmatprep.mubr.bf16.mxu0 %v2022_v33 }
  0x7b   :  { %1374 = vmatmul.mubr.bf16.gmra.mrb[8].mxu0 %v2026_v34 }
  0x7c   :  { %1377 = vmatprep.mubr.bf16.mxu0 %v2028_v35 }
  0x83   :  { %1378 = vmatmul.mubr.bf16.gmra.mrb[12].mxu0 %v2032_v36 }
  0x84   :  { %1453 = vmatprep.mubr.bf16.mxu0 %v2011_v4 }
 0x13e   :  { %v1367_v40 = vpop.f32.mrb[0].mxu0 }
 0x13f   :  { %v253_v41 = vpop.f32.mrb[1].mxu0 }
 0x140   :  { %v1368_v42 = vpop.f32.mrb[2].mxu0  ;;  %1413 = vmatprep.mubr.f32.mxu1 %v253_v41 }
 0x141   :  { %v256_v43 = vpop.f32.mrb[3].mxu0 }
 0x142   :  { %1414 = vmatmul.mubr.f32.vlgmr.msra.gmra.mrb[0].mxu1 %v256_v43 }
 0x143   :  { %1416 = vmatprep.mubr.f32.mxu1 %v1367_v40  ;;  %1648 = vmatpush3.bf16.msra.mxu1 %v1645_v59 }
 0x144   :  { %1650 = vmatprep.subr.bf16.mxu1 %v1649_v61 }
 0x146   :  { %v1371_v44 = vpop.f32.mrb[4].mxu0  ;;  %1417 = vmatmul.mubr.f32.gmra.mrb[2].mxu1 %v1368_v42 }
 0x147   :  { %v269_v45 = vpop.f32.mrb[5].mxu0  ;;  %1652 = vmatpush3.bf16.msra.mxu1 %v1649_v61 }
 0x148   :  { %v1372_v46 = vpop.f32.mrb[6].mxu0  ;;  %1419 = vmatprep.mubr.f32.mxu1 %v269_v45  ;;  %1654 = vmatprep.subr.bf16.mxu1 %v1653_v0 }
 0x149   :  { %v272_v47 = vpop.f32.mrb[7].mxu0 }
 0x14a   :  { %1420 = vmatmul.mubr.f32.gmra.mrb[4].mxu1 %v272_v47 }
 0x14b   :  { %1422 = vmatprep.mubr.f32.mxu1 %v1371_v44  ;;  %1656 = vmatpush3.bf16.msra.mxu1 %v1653_v0 }
 0x14c   :  { %1658 = vmatprep.subr.bf16.mxu1 %v1657_v3 }
 0x14e   :  { %v1375_v48 = vpop.f32.mrb[8].mxu0  ;;  %1423 = vmatmul.mubr.f32.gmra.mrb[6].mxu1 %v1372_v46 }
 0x14f   :  { %v285_v49 = vpop.f32.mrb[9].mxu0  ;;  %1660 = vmatpush3.bf16.msra.mxu1 %v1657_v3 }
 0x150   :  { %v1376_v50 = vpop.f32.mrb[10].mxu0  ;;  %1425 = vmatprep.mubr.f32.mxu1 %v285_v49  ;;  %1662 = vmatprep.subr.bf16.mxu1 %v1661_v7 }
 0x151   :  { %v288_v51 = vpop.f32.mrb[11].mxu0 }
 0x152   :  { %1426 = vmatmul.mubr.f32.gmra.mrb[8].mxu1 %v288_v51 }
 0x153   :  { %1428 = vmatprep.mubr.f32.mxu1 %v1375_v48  ;;  %1664 = vmatpush3.bf16.msra.mxu1 %v1661_v7 }
 0x154   :  { %1666 = vmatprep.subr.bf16.mxu1 %v1665_v10 }
 0x156   :  { %v1379_v52 = vpop.f32.mrb[12].mxu0  ;;  %1429 = vmatmul.mubr.f32.gmra.mrb[10].mxu1 %v1376_v50 }
 0x157   :  { %v301_v53 = vpop.f32.mrb[13].mxu0  ;;  %1668 = vmatpush3.bf16.msra.mxu1 %v1665_v10 }
 0x158   :  { %v1380_v54 = vpop.f32.mrb[14].mxu0  ;;  %1431 = vmatprep.mubr.f32.mxu1 %v301_v53  ;;  %1670 = vmatprep.subr.bf16.mxu1 %v1669_v13 }
 0x159   :  { %v304_v55 = vpop.f32.mrb[15].mxu0 }
 0x15a   :  { %1432 = vmatmul.mubr.f32.gmra.mrb[12].mxu1 %v304_v55 }
 0x15b   :  { %1434 = vmatprep.mubr.f32.mxu1 %v1379_v52  ;;  %1672 = vmatpush3.bf16.msra.mxu1 %v1669_v13 }
 0x15e   :  { %1435 = vmatmul.mubr.f32.gmra.mrb[14].mxu1 %v1380_v54 }
 0x215   :  { %v1415_v15 = vpop.f32.mrb[0].mxu1 }
 0x216   :  { %v392_v16 = vadd.f32 %v1415_v15, %v2036_v14  ;;  %v386_v17 = vpop.f32.mrb[1].mxu1 }
 0x217   :  { %v387_v18 = vadd.f32 %v2036_v14, %v386_v17 }
 0x218   :  { %v466_v19 = vmax.f32 %v392_v16, 0.0  ;;  %v504_v16 = vld [vmem:[#allocation7 + $0xf8] sm:$0xff] }
 0x219   :  { %v465_v20 = vmax.f32 %v387_v18, 0.0  ;;  %v1418_v21 = vpop.f32.mrb[2].mxu1 }
 0x21a   :  { %v402_v22 = vadd.f32 %v1418_v21, %v2036_v14  ;;  %v396_v23 = vpop.f32.mrb[3].mxu1 }
 0x21b   :  { %v481_v25 = vpack.c.bf16 %v466_v19, %v465_v20  ;;  %v397_v26 = vadd.f32 %v2036_v14, %v396_v23 }
 0x21c   :  { %v468_v28 = vmax.f32 %v402_v22, 0.0 }
 0x21d   :  { %v467_v29 = vmax.f32 %v397_v26, 0.0  ;;  %v1421_v30 = vpop.f32.mrb[4].mxu1  ;;  %1437 = vmatprep.subr.bf16.mxu0 %v481_v25 }
 0x21e   :  { %v412_v31 = vadd.f32 %v1421_v30, %v2036_v14  ;;  %v406_v37 = vpop.f32.mrb[5].mxu1  ;;  %1438 = vmatpush3.bf16.msra.mxu0 %v481_v25 }
 0x21f   :  { %v482_v38 = vpack.c.bf16 %v468_v28, %v467_v29  ;;  %v407_v39 = vadd.f32 %v2036_v14, %v406_v37 }
 0x220   :  { %v470_v40 = vmax.f32 %v412_v31, 0.0 }
 0x221   :  { %v469_v41 = vmax.f32 %v407_v39, 0.0  ;;  %v1424_v42 = vpop.f32.mrb[6].mxu1  ;;  %1439 = vmatprep.subr.bf16.mxu0 %v482_v38 }
 0x222   :  { %v422_v43 = vadd.f32 %v1424_v42, %v2036_v14  ;;  %v416_v44 = vpop.f32.mrb[7].mxu1  ;;  %1440 = vmatpush3.bf16.msra.mxu0 %v482_v38  ;;  %v778_v42 = vld [vmem:[#allocation7 + $0x110] sm:$0xff] }
 0x223   :  { %v483_v45 = vpack.c.bf16 %v470_v40, %v469_v41  ;;  %v417_v46 = vadd.f32 %v2036_v14, %v416_v44  ;;  %v776_v40 = vld [vmem:[#allocation7 + $0x100] sm:$0xff]  ;;  %v777_v41 = vld [vmem:[#allocation7 + $0x108] sm:$0xff]  ;;  %v779_v44 = vld [vmem:[#allocation7 + $0x118] sm:$0xff] }
 0x224   :  { %v472_v47 = vmax.f32 %v422_v43, 0.0  ;;  %v1677_v43 = vpack.c.bf16 %v777_v41, %v776_v40 }
 0x225   :  { %v471_v48 = vmax.f32 %v417_v46, 0.0  ;;  %v1427_v49 = vpop.f32.mrb[8].mxu1  ;;  %1441 = vmatprep.subr.bf16.mxu0 %v483_v45  ;;  %v780_v46 = vld [vmem:[#allocation7 + $0x120] sm:$0xff] }
 0x226   :  { %v432_v50 = vadd.f32 %v1427_v49, %v2036_v14  ;;  %v426_v51 = vpop.f32.mrb[9].mxu1  ;;  %1442 = vmatpush3.bf16.msra.mxu0 %v483_v45  ;;  %v1681_v45 = vpack.c.bf16 %v779_v44, %v778_v42  ;;  %v782_v49 = vld [vmem:[#allocation7 + $0x130] sm:$0xff] }
 0x227   :  { %v484_v52 = vpack.c.bf16 %v472_v47, %v471_v48  ;;  %v427_v53 = vadd.f32 %v2036_v14, %v426_v51  ;;  %v781_v47 = vld [vmem:[#allocation7 + $0x128] sm:$0xff] }
 0x228   :  { %v474_v54 = vmax.f32 %v432_v50, 0.0  ;;  %v1685_v48 = vpack.c.bf16 %v781_v47, %v780_v46  ;;  %v783_v50 = vld [vmem:[#allocation7 + $0x138] sm:$0xff] }
 0x229   :  { %v473_v55 = vmax.f32 %v427_v53, 0.0  ;;  %v1430_v56 = vpop.f32.mrb[10].mxu1  ;;  %1443 = vmatprep.subr.bf16.mxu0 %v484_v52  ;;  %v1689_v51 = vpack.c.bf16 %v783_v50, %v782_v49  ;;  %v785_v53 = vld [vmem:[#allocation7 + $0x148] sm:$0xff] }
 0x22a   :  { %v442_v57 = vadd.f32 %v1430_v56, %v2036_v14  ;;  %v436_v58 = vpop.f32.mrb[11].mxu1  ;;  %1444 = vmatpush3.bf16.msra.mxu0 %v484_v52  ;;  %v784_v52 = vld [vmem:[#allocation7 + $0x140] sm:$0xff]  ;;  %v787_v56 = vld [vmem:[#allocation7 + $0x158] sm:$0xff] }
 0x22b   :  { %v485_v59 = vpack.c.bf16 %v474_v54, %v473_v55  ;;  %v437_v60 = vadd.f32 %v2036_v14, %v436_v58  ;;  %v1693_v54 = vpack.c.bf16 %v785_v53, %v784_v52  ;;  %v786_v55 = vld [vmem:[#allocation7 + $0x150] sm:$0xff]  ;;  %v788_v58 = vld [vmem:[#allocation7 + $0x160] sm:$0xff] }
 0x22c   :  { %v476_v61 = vmax.f32 %v442_v57, 0.0  ;;  %v1697_v57 = vpack.c.bf16 %v787_v56, %v786_v55 }
 0x22d   :  { %v475_v62 = vmax.f32 %v437_v60, 0.0  ;;  %v1433_v63 = vpop.f32.mrb[12].mxu1  ;;  %1445 = vmatprep.subr.bf16.mxu0 %v485_v59 }
 0x22e   :  { %v452_v0 = vadd.f32 %v1433_v63, %v2036_v14  ;;  %v446_v1 = vpop.f32.mrb[13].mxu1  ;;  %1446 = vmatpush3.bf16.msra.mxu0 %v485_v59  ;;  %v789_v59 = vld [vmem:[#allocation7 + $0x168] sm:$0xff] }
 0x22f   :  { %v486_v2 = vpack.c.bf16 %v476_v61, %v475_v62  ;;  %v447_v3 = vadd.f32 %v2036_v14, %v446_v1  ;;  %v1701_v60 = vpack.c.bf16 %v789_v59, %v788_v58  ;;  %v2062_v61 = vld [vmem:[#allocation8 + $0x8] ss:$0 sm:$0xff] }
 0x230   :  { %v478_v5 = vmax.f32 %v452_v0, 0.0 }
 0x231   :  { %v477_v6 = vmax.f32 %v447_v3, 0.0  ;;  %v1436_v7 = vpop.f32.mrb[14].mxu1  ;;  %1447 = vmatprep.subr.bf16.mxu0 %v486_v2 }
 0x232   :  { %v462_v8 = vadd.f32 %v1436_v7, %v2036_v14  ;;  %v456_v9 = vpop.f32.mrb[15].mxu1  ;;  %1448 = vmatpush3.bf16.msra.mxu0 %v486_v2 }
 0x233   :  { %v487_v10 = vpack.c.bf16 %v478_v5, %v477_v6  ;;  %v457_v11 = vadd.f32 %v2036_v14, %v456_v9  ;;  %v503_v14 = vld [vmem:[#allocation7 + $0xf0] sm:$0xff] }
 0x234   :  { %v480_v12 = vmax.f32 %v462_v8, 0.0  ;;  %v1673_v17 = vpack.c.bf16 %v504_v16, %v503_v14 }
 0x235   :  { %v479_v13 = vmax.f32 %v457_v11, 0.0  ;;  %1449 = vmatprep.subr.bf16.mxu0 %v487_v10 }
 0x236   :  { %1450 = vmatpush3.bf16.msra.mxu0 %v487_v10  ;;  %1674 = vmatprep.subr.bf16.mxu1 %v1673_v17 }
 0x237   :  { %v488_v15 = vpack.c.bf16 %v480_v12, %v479_v13  ;;  %1676 = vmatpush3.bf16.msra.mxu1 %v1673_v17 }
 0x238   :  { %1678 = vmatprep.subr.bf16.mxu1 %v1677_v43 }
 0x239   :  { %1451 = vmatprep.subr.bf16.mxu0 %v488_v15 }
 0x23a   :  { %1452 = vmatpush3.bf16.msra.mxu0 %v488_v15 }
 0x23d   :  { %1454 = vmatmul.mubr.bf16.vlgmr.msra.gmra.mrb[16].mxu0 %v2014_v24 }
 0x23e   :  { %1457 = vmatprep.mubr.bf16.mxu0 %v2016_v27 }
 0x245   :  { %1458 = vmatmul.mubr.bf16.gmra.mrb[20].mxu0 %v2020_v32 }
 0x246   :  { %1461 = vmatprep.mubr.bf16.mxu0 %v2022_v33 }
 0x24d   :  { %1462 = vmatmul.mubr.bf16.gmra.mrb[24].mxu0 %v2026_v34 }
 0x24e   :  { %1465 = vmatprep.mubr.bf16.mxu0 %v2028_v35 }
 0x255   :  { %1466 = vmatmul.mubr.bf16.gmra.mrb[28].mxu0 %v2032_v36 }
 0x256   :  { %1541 = vmatprep.mubr.bf16.mxu0 %v2011_v4 }
 0x310   :  { %v1455_v18 = vpop.f32.mrb[16].mxu0 }
 0x311   :  { %v540_v19 = vpop.f32.mrb[17].mxu0 }
 0x312   :  { %v1456_v20 = vpop.f32.mrb[18].mxu0  ;;  %1501 = vmatprep.mubr.f32.mxu1 %v540_v19 }
 0x313   :  { %v543_v21 = vpop.f32.mrb[19].mxu0 }
 0x314   :  { %1502 = vmatmul.mubr.f32.vlgmr.msra.gmra.mrb[16].mxu1 %v543_v21 }
 0x315   :  { %1504 = vmatprep.mubr.f32.mxu1 %v1455_v18  ;;  %1680 = vmatpush3.bf16.msra.mxu1 %v1677_v43 }
 0x316   :  { %1682 = vmatprep.subr.bf16.mxu1 %v1681_v45 }
 0x318   :  { %v1459_v22 = vpop.f32.mrb[20].mxu0  ;;  %1505 = vmatmul.mubr.f32.gmra.mrb[18].mxu1 %v1456_v20 }
 0x319   :  { %v556_v23 = vpop.f32.mrb[21].mxu0  ;;  %1684 = vmatpush3.bf16.msra.mxu1 %v1681_v45 }
 0x31a   :  { %v1460_v25 = vpop.f32.mrb[22].mxu0  ;;  %1507 = vmatprep.mubr.f32.mxu1 %v556_v23  ;;  %1686 = vmatprep.subr.bf16.mxu1 %v1685_v48 }
 0x31b   :  { %v559_v26 = vpop.f32.mrb[23].mxu0 }
 0x31c   :  { %1508 = vmatmul.mubr.f32.gmra.mrb[20].mxu1 %v559_v26 }
 0x31d   :  { %1510 = vmatprep.mubr.f32.mxu1 %v1459_v22  ;;  %1688 = vmatpush3.bf16.msra.mxu1 %v1685_v48 }
 0x31e   :  { %1690 = vmatprep.subr.bf16.mxu1 %v1689_v51 }
 0x320   :  { %v1463_v4 = vpop.f32.mrb[24].mxu0  ;;  %1511 = vmatmul.mubr.f32.gmra.mrb[22].mxu1 %v1460_v25 }
 0x321   :  { %v572_v28 = vpop.f32.mrb[25].mxu0  ;;  %1692 = vmatpush3.bf16.msra.mxu1 %v1689_v51 }
 0x322   :  { %v1464_v29 = vpop.f32.mrb[26].mxu0  ;;  %1513 = vmatprep.mubr.f32.mxu1 %v572_v28  ;;  %1694 = vmatprep.subr.bf16.mxu1 %v1693_v54 }
 0x323   :  { %v575_v30 = vpop.f32.mrb[27].mxu0 }
 0x324   :  { %1514 = vmatmul.mubr.f32.gmra.mrb[24].mxu1 %v575_v30 }
 0x325   :  { %1516 = vmatprep.mubr.f32.mxu1 %v1463_v4  ;;  %1696 = vmatpush3.bf16.msra.mxu1 %v1693_v54 }
 0x326   :  { %1698 = vmatprep.subr.bf16.mxu1 %v1697_v57 }
 0x328   :  { %v1467_v31 = vpop.f32.mrb[28].mxu0  ;;  %1517 = vmatmul.mubr.f32.gmra.mrb[26].mxu1 %v1464_v29 }
 0x329   :  { %v588_v37 = vpop.f32.mrb[29].mxu0  ;;  %1700 = vmatpush3.bf16.msra.mxu1 %v1697_v57 }
 0x32a   :  { %v1468_v38 = vpop.f32.mrb[30].mxu0  ;;  %1519 = vmatprep.mubr.f32.mxu1 %v588_v37  ;;  %1702 = vmatprep.subr.bf16.mxu1 %v1701_v60 }
 0x32b   :  { %v591_v39 = vpop.f32.mrb[31].mxu0 }
 0x32c   :  { %1520 = vmatmul.mubr.f32.gmra.mrb[28].mxu1 %v591_v39 }
 0x32d   :  { %1522 = vmatprep.mubr.f32.mxu1 %v1467_v31  ;;  %1704 = vmatpush3.bf16.msra.mxu1 %v1701_v60 }
 0x330   :  { %1523 = vmatmul.mubr.f32.gmra.mrb[30].mxu1 %v1468_v38 }
 0x3e7   :  { %v1503_v62 = vpop.f32.mrb[16].mxu1 }
 0x3e8   :  { %v679_v63 = vadd.f32 %v1503_v62, %v2062_v61  ;;  %v673_v0 = vpop.f32.mrb[17].mxu1  ;;  %v791_v62 = vld [vmem:[#allocation7 + $0x178] sm:$0xff] }
 0x3e9   :  { %v674_v1 = vadd.f32 %v2062_v61, %v673_v0 }
 0x3ea   :  { %v753_v2 = vmax.f32 %v679_v63, 0.0 }
 0x3eb   :  { %v752_v3 = vmax.f32 %v674_v1, 0.0  ;;  %v1506_v5 = vpop.f32.mrb[18].mxu1 }
 0x3ec   :  { %v689_v6 = vadd.f32 %v1506_v5, %v2062_v61  ;;  %v683_v7 = vpop.f32.mrb[19].mxu1 }
 0x3ed   :  { %v768_v8 = vpack.c.bf16 %v753_v2, %v752_v3  ;;  %v684_v9 = vadd.f32 %v2062_v61, %v683_v7 }
 0x3ee   :  { %v755_v10 = vmax.f32 %v689_v6, 0.0 }
 0x3ef   :  { %v754_v11 = vmax.f32 %v684_v9, 0.0  ;;  %v1509_v12 = vpop.f32.mrb[20].mxu1  ;;  %1525 = vmatprep.subr.bf16.mxu0 %v768_v8 }
 0x3f0   :  { %v699_v13 = vadd.f32 %v1509_v12, %v2062_v61  ;;  %v693_v15 = vpop.f32.mrb[21].mxu1  ;;  %1526 = vmatpush3.bf16.msra.mxu0 %v768_v8 }
 0x3f1   :  { %v769_v14 = vpack.c.bf16 %v755_v10, %v754_v11  ;;  %v694_v16 = vadd.f32 %v2062_v61, %v693_v15  ;;  %v2087_v10 = vld [vmem:[#allocation8 + $0x10] ss:$0 sm:$0xff] }
 0x3f2   :  { %v757_v17 = vmax.f32 %v699_v13, 0.0 }
 0x3f3   :  { %v756_v18 = vmax.f32 %v694_v16, 0.0  ;;  %v1512_v19 = vpop.f32.mrb[22].mxu1  ;;  %1527 = vmatprep.subr.bf16.mxu0 %v769_v14 }
 0x3f4   :  { %v709_v20 = vadd.f32 %v1512_v19, %v2062_v61  ;;  %v703_v21 = vpop.f32.mrb[23].mxu1  ;;  %1528 = vmatpush3.bf16.msra.mxu0 %v769_v14 }
 0x3f5   :  { %v770_v22 = vpack.c.bf16 %v757_v17, %v756_v18  ;;  %v704_v23 = vadd.f32 %v2062_v61, %v703_v21 }
 0x3f6   :  { %v759_v25 = vmax.f32 %v709_v20, 0.0 }
 0x3f7   :  { %v758_v26 = vmax.f32 %v704_v23, 0.0  ;;  %v1515_v4 = vpop.f32.mrb[24].mxu1  ;;  %1529 = vmatprep.subr.bf16.mxu0 %v770_v22 }
 0x3f8   :  { %v719_v28 = vadd.f32 %v1515_v4, %v2062_v61  ;;  %v713_v29 = vpop.f32.mrb[25].mxu1  ;;  %1530 = vmatpush3.bf16.msra.mxu0 %v770_v22 }
 0x3f9   :  { %v771_v30 = vpack.c.bf16 %v759_v25, %v758_v26  ;;  %v714_v31 = vadd.f32 %v2062_v61, %v713_v29 }
 0x3fa   :  { %v761_v37 = vmax.f32 %v719_v28, 0.0 }
 0x3fb   :  { %v760_v38 = vmax.f32 %v714_v31, 0.0  ;;  %v1518_v39 = vpop.f32.mrb[26].mxu1  ;;  %1531 = vmatprep.subr.bf16.mxu0 %v771_v30 }
 0x3fc   :  { %v729_v40 = vadd.f32 %v1518_v39, %v2062_v61  ;;  %v723_v41 = vpop.f32.mrb[27].mxu1  ;;  %1532 = vmatpush3.bf16.msra.mxu0 %v771_v30 }
 0x3fd   :  { %v772_v42 = vpack.c.bf16 %v761_v37, %v760_v38  ;;  %v724_v43 = vadd.f32 %v2062_v61, %v723_v41 }
 0x3fe   :  { %v763_v44 = vmax.f32 %v729_v40, 0.0 }
 0x3ff   :  { %v762_v45 = vmax.f32 %v724_v43, 0.0  ;;  %v1521_v46 = vpop.f32.mrb[28].mxu1  ;;  %1533 = vmatprep.subr.bf16.mxu0 %v772_v42 }
 0x400   :  { %v739_v47 = vadd.f32 %v1521_v46, %v2062_v61  ;;  %v733_v48 = vpop.f32.mrb[29].mxu1  ;;  %1534 = vmatpush3.bf16.msra.mxu0 %v772_v42 }
 0x401   :  { %v773_v49 = vpack.c.bf16 %v763_v44, %v762_v45  ;;  %v734_v50 = vadd.f32 %v2062_v61, %v733_v48 }
 0x402   :  { %v765_v51 = vmax.f32 %v739_v47, 0.0 }
 0x403   :  { %v764_v52 = vmax.f32 %v734_v50, 0.0  ;;  %v1524_v53 = vpop.f32.mrb[30].mxu1  ;;  %1535 = vmatprep.subr.bf16.mxu0 %v773_v49 }
 0x404   :  { %v749_v54 = vadd.f32 %v1524_v53, %v2062_v61  ;;  %v743_v55 = vpop.f32.mrb[31].mxu1  ;;  %1536 = vmatpush3.bf16.msra.mxu0 %v773_v49 }
 0x405   :  { %v774_v56 = vpack.c.bf16 %v765_v51, %v764_v52  ;;  %v744_v57 = vadd.f32 %v2062_v61, %v743_v55  ;;  %v790_v61 = vld [vmem:[#allocation7 + $0x170] sm:$0xff] }
 0x406   :  { %v767_v58 = vmax.f32 %v749_v54, 0.0  ;;  %v1705_v63 = vpack.c.bf16 %v791_v62, %v790_v61 }
 0x407   :  { %v766_v59 = vmax.f32 %v744_v57, 0.0  ;;  %1537 = vmatprep.subr.bf16.mxu0 %v774_v56 }
 0x408   :  { %1538 = vmatpush3.bf16.msra.mxu0 %v774_v56  ;;  %1706 = vmatprep.subr.bf16.mxu1 %v1705_v63 }
 0x409   :  { %v775_v60 = vpack.c.bf16 %v767_v58, %v766_v59  ;;  %1708 = vmatpush3.bf16.msra.mxu1 %v1705_v63 }
 0x40b   :  { %1539 = vmatprep.subr.bf16.mxu0 %v775_v60 }
 0x40c   :  { %1540 = vmatpush3.bf16.msra.mxu0 %v775_v60 }
 0x40f   :  { %1542 = vmatmul.mubr.bf16.vlgmr.msra.gmra.mrb[32].mxu0 %v2014_v24 }
 0x410   :  { %1545 = vmatprep.mubr.bf16.mxu0 %v2016_v27 }
 0x417   :  { %1546 = vmatmul.mubr.bf16.gmra.mrb[36].mxu0 %v2020_v32 }
 0x418   :  { %1549 = vmatprep.mubr.bf16.mxu0 %v2022_v33 }
 0x41f   :  { %1550 = vmatmul.mubr.bf16.gmra.mrb[40].mxu0 %v2026_v34 }
 0x420   :  { %1553 = vmatprep.mubr.bf16.mxu0 %v2028_v35 }
 0x427   :  { %1554 = vmatmul.mubr.bf16.gmra.mrb[44].mxu0 %v2032_v36 }
 0x4e2   :  { %v1543_v0 = vpop.f32.mrb[32].mxu0 }
 0x4e3   :  { %v827_v1 = vpop.f32.mrb[33].mxu0 }
 0x4e4   :  { %v1544_v24 = vpop.f32.mrb[34].mxu0  ;;  %1589 = vmatprep.mubr.f32.mxu1 %v827_v1 }
 0x4e5   :  { %v830_v27 = vpop.f32.mrb[35].mxu0 }
 0x4e6   :  { %1590 = vmatmul.mubr.f32.vlgmr.msra.gmra.mrb[32].mxu1 %v830_v27 }
 0x4e7   :  { %1592 = vmatprep.mubr.f32.mxu1 %v1543_v0 }
 0x4ea   :  { %v1547_v32 = vpop.f32.mrb[36].mxu0  ;;  %1593 = vmatmul.mubr.f32.gmra.mrb[34].mxu1 %v1544_v24 }
 0x4eb   :  { %v843_v33 = vpop.f32.mrb[37].mxu0 }
 0x4ec   :  { %v1548_v34 = vpop.f32.mrb[38].mxu0  ;;  %1595 = vmatprep.mubr.f32.mxu1 %v843_v33 }
 0x4ed   :  { %v846_v35 = vpop.f32.mrb[39].mxu0 }
 0x4ee   :  { %1596 = vmatmul.mubr.f32.gmra.mrb[36].mxu1 %v846_v35 }
 0x4ef   :  { %1598 = vmatprep.mubr.f32.mxu1 %v1547_v32 }
 0x4f2   :  { %v1551_v36 = vpop.f32.mrb[40].mxu0  ;;  %1599 = vmatmul.mubr.f32.gmra.mrb[38].mxu1 %v1548_v34 }
 0x4f3   :  { %v859_v2 = vpop.f32.mrb[41].mxu0 }
 0x4f4   :  { %v1552_v3 = vpop.f32.mrb[42].mxu0  ;;  %1601 = vmatprep.mubr.f32.mxu1 %v859_v2 }
 0x4f5   :  { %v862_v5 = vpop.f32.mrb[43].mxu0 }
 0x4f6   :  { %1602 = vmatmul.mubr.f32.gmra.mrb[40].mxu1 %v862_v5 }
 0x4f7   :  { %1604 = vmatprep.mubr.f32.mxu1 %v1551_v36 }
 0x4fa   :  { %v1555_v6 = vpop.f32.mrb[44].mxu0  ;;  %1605 = vmatmul.mubr.f32.gmra.mrb[42].mxu1 %v1552_v3 }
 0x4fb   :  { %v875_v7 = vpop.f32.mrb[45].mxu0 }
 0x4fc   :  { %v1556_v8 = vpop.f32.mrb[46].mxu0  ;;  %1607 = vmatprep.mubr.f32.mxu1 %v875_v7 }
 0x4fd   :  { %v878_v9 = vpop.f32.mrb[47].mxu0 }
 0x4fe   :  { %1608 = vmatmul.mubr.f32.gmra.mrb[44].mxu1 %v878_v9 }
 0x4ff   :  { %1610 = vmatprep.mubr.f32.mxu1 %v1555_v6 }
 0x502   :  { %1611 = vmatmul.mubr.f32.gmra.mrb[46].mxu1 %v1556_v8 }
 0x5b9   :  { %v1591_v11 = vpop.f32.mrb[32].mxu1 }
 0x5ba   :  { %v966_v12 = vadd.f32 %v1591_v11, %v2087_v10  ;;  %v960_v13 = vpop.f32.mrb[33].mxu1 }
 0x5bb   :  { %v961_v15 = vadd.f32 %v2087_v10, %v960_v13 }
 0x5bc   :  { %v1190_v14 = vmul.f32 -1.442695, %v966_v12 }
 0x5bd   :  { %v1189_v16 = vmul.f32 -1.442695, %v961_v15  ;;  %v1594_v17 = vpop.f32.mrb[34].mxu1 }
 0x5be   :  { %1734 = vpow2.f32 %v1190_v14  ;;  %v976_v18 = vadd.f32 %v1594_v17, %v2087_v10  ;;  %v970_v19 = vpop.f32.mrb[35].mxu1 }
 0x5bf   :  { %1736 = vpow2.f32 %v1189_v16  ;;  %v971_v20 = vadd.f32 %v2087_v10, %v970_v19 }
 0x5c0   :  { %v1192_v21 = vmul.f32 -1.442695, %v976_v18 }
 0x5c1   :  { %v1191_v22 = vmul.f32 -1.442695, %v971_v20  ;;  %v1597_v23 = vpop.f32.mrb[36].mxu1 }
 0x5c2   :  { %1738 = vpow2.f32 %v1192_v21  ;;  %v986_v25 = vadd.f32 %v1597_v23, %v2087_v10  ;;  %v980_v26 = vpop.f32.mrb[37].mxu1 }
 0x5c3   :  { %1740 = vpow2.f32 %v1191_v22  ;;  %v981_v4 = vadd.f32 %v2087_v10, %v980_v26 }
 0x5c4   :  { %v1194_v28 = vmul.f32 -1.442695, %v986_v25 }
 0x5c5   :  { %v1193_v29 = vmul.f32 -1.442695, %v981_v4  ;;  %v1600_v30 = vpop.f32.mrb[38].mxu1 }
 0x5c6   :  { %1742 = vpow2.f32 %v1194_v28  ;;  %v996_v31 = vadd.f32 %v1600_v30, %v2087_v10  ;;  %v990_v37 = vpop.f32.mrb[39].mxu1 }
 0x5c7   :  { %1744 = vpow2.f32 %v1193_v29  ;;  %v991_v38 = vadd.f32 %v2087_v10, %v990_v37 }
 0x5c8   :  { %v1735_v39 = vpop.eup %1734  ;;  %v1196_v40 = vmul.f32 -1.442695, %v996_v31 }
 0x5c9   :  { %v1737_v41 = vpop.eup %1736  ;;  %v1088_v42 = vadd.f32 1.0, %v1735_v39  ;;  %v1195_v43 = vmul.f32 -1.442695, %v991_v38  ;;  %v1603_v44 = vpop.f32.mrb[40].mxu1 }
 0x5ca   :  { %v1087_v45 = vadd.f32 1.0, %v1737_v41  ;;  %1746 = vpow2.f32 %v1196_v40  ;;  %v1006_v46 = vadd.f32 %v1603_v44, %v2087_v10  ;;  %v1000_v47 = vpop.f32.mrb[41].mxu1 }
 0x5cb   :  { %1748 = vrcp.f32 %v1088_v42  ;;  %v1001_v48 = vadd.f32 %v2087_v10, %v1000_v47 }
 0x5cc   :  { %v1739_v49 = vpop.eup %1738  ;;  %1750 = vrcp.f32 %v1087_v45  ;;  %v1198_v50 = vmul.f32 -1.442695, %v1006_v46 }
 0x5cd   :  { %v1741_v51 = vpop.eup %1740  ;;  %v1090_v52 = vadd.f32 1.0, %v1739_v49  ;;  %1752 = vpow2.f32 %v1195_v43  ;;  %v1197_v53 = vmul.f32 -1.442695, %v1001_v48  ;;  %v1606_v54 = vpop.f32.mrb[42].mxu1 }
 0x5ce   :  { %v1089_v55 = vadd.f32 1.0, %v1741_v51  ;;  %1754 = vpow2.f32 %v1198_v50  ;;  %v1016_v56 = vadd.f32 %v1606_v54, %v2087_v10  ;;  %v1010_v57 = vpop.f32.mrb[43].mxu1 }
 0x5cf   :  { %1756 = vrcp.f32 %v1090_v52  ;;  %v1011_v58 = vadd.f32 %v2087_v10, %v1010_v57 }
 0x5d0   :  { %v1743_v59 = vpop.eup %1742  ;;  %1758 = vrcp.f32 %v1089_v55  ;;  %v1200_v60 = vmul.f32 -1.442695, %v1016_v56 }
 0x5d1   :  { %v1745_v61 = vpop.eup %1744  ;;  %v1092_v62 = vadd.f32 1.0, %v1743_v59  ;;  %1760 = vpow2.f32 %v1197_v53  ;;  %v1199_v63 = vmul.f32 -1.442695, %v1011_v58  ;;  %v1609_v0 = vpop.f32.mrb[44].mxu1 }
 0x5d2   :  { %v1091_v1 = vadd.f32 1.0, %v1745_v61  ;;  %1762 = vpow2.f32 %v1200_v60  ;;  %v1026_v24 = vadd.f32 %v1609_v0, %v2087_v10  ;;  %v1020_v27 = vpop.f32.mrb[45].mxu1 }
 0x5d3   :  { %1764 = vrcp.f32 %v1092_v62  ;;  %v1021_v32 = vadd.f32 %v2087_v10, %v1020_v27 }
 0x5d4   :  { %v1747_v33 = vpop.eup %1746  ;;  %1766 = vrcp.f32 %v1091_v1  ;;  %v1202_v34 = vmul.f32 -1.442695, %v1026_v24 }
 0x5d5   :  { %v1749_v35 = vpop.eup %1748  ;;  %v1094_v36 = vadd.f32 1.0, %v1747_v33  ;;  %1768 = vpow2.f32 %v1199_v63  ;;  %v1201_v2 = vmul.f32 -1.442695, %v1021_v32  ;;  %v1612_v3 = vpop.f32.mrb[46].mxu1 }
 0x5d6   :  { %v1751_v5 = vpop.eup %1750  ;;  %1136 = vst [vmem:[#allocation10 + $0x8] sm:$0xff] %v1749_v35  ;;  %1770 = vpow2.f32 %v1202_v34  ;;  %v1036_v6 = vadd.f32 %v1612_v3, %v2087_v10  ;;  %v1030_v7 = vpop.f32.mrb[47].mxu1 }
 0x5d7   :  { %v1753_v8 = vpop.eup %1752  ;;  %1135 = vst [vmem:[#allocation10] sm:$0xff] %v1751_v5  ;;  %1772 = vrcp.f32 %v1094_v36  ;;  %v1031_v9 = vadd.f32 %v2087_v10, %v1030_v7 }
 0x5d8   :  { %v1755_v11 = vpop.eup %1754  ;;  %v1093_v12 = vadd.f32 1.0, %v1753_v8  ;;  %1774 = vpow2.f32 %v1201_v2  ;;  %v1204_v13 = vmul.f32 -1.442695, %v1036_v6 }
 0x5d9   :  { %v1757_v15 = vpop.eup %1756  ;;  %v1096_v14 = vadd.f32 1.0, %v1755_v11  ;;  %v1203_v16 = vmul.f32 -1.442695, %v1031_v9 }
 0x5da   :  { %v1759_v17 = vpop.eup %1758  ;;  %1138 = vst [vmem:[#allocation10 + $0x18] sm:$0xff] %v1757_v15  ;;  %1776 = vrcp.f32 %v1093_v12 }
 0x5db   :  { %v1761_v18 = vpop.eup %1760  ;;  %1137 = vst [vmem:[#allocation10 + $0x10] sm:$0xff] %v1759_v17  ;;  %1778 = vrcp.f32 %v1096_v14 }
 0x5dc   :  { %v1763_v19 = vpop.eup %1762  ;;  %v1095_v20 = vadd.f32 1.0, %v1761_v18  ;;  %1780 = vpow2.f32 %v1204_v13 }
 0x5dd   :  { %v1765_v21 = vpop.eup %1764  ;;  %v1098_v22 = vadd.f32 1.0, %v1763_v19  ;;  %1782 = vpow2.f32 %v1203_v16 }
 0x5de   :  { %v1767_v10 = vpop.eup %1766  ;;  %1140 = vst [vmem:[#allocation10 + $0x28] sm:$0xff] %v1765_v21  ;;  %1784 = vrcp.f32 %v1095_v20 }
 0x5df   :  { %v1769_v23 = vpop.eup %1768  ;;  %1139 = vst [vmem:[#allocation10 + $0x20] sm:$0xff] %v1767_v10  ;;  %1786 = vrcp.f32 %v1098_v22 }
 0x5e0   :  { %v1771_v25 = vpop.eup %1770  ;;  %v1097_v26 = vadd.f32 1.0, %v1769_v23 }
 0x5e1   :  { %v1773_v4 = vpop.eup %1772  ;;  %v1100_v28 = vadd.f32 1.0, %v1771_v25 }
 0x5e2   :  { %v1775_v29 = vpop.eup %1774  ;;  %1142 = vst [vmem:[#allocation10 + $0x38] sm:$0xff] %v1773_v4  ;;  %1788 = vrcp.f32 %v1097_v26 }
 0x5e3   :  { %1790 = vrcp.f32 %v1100_v28  ;;  %v1099_v30 = vadd.f32 1.0, %v1775_v29 }
 0x5e4   :  { %v1777_v31 = vpop.eup %1776 }
 0x5e5   :  { %v1779_v37 = vpop.eup %1778  ;;  %1141 = vst [vmem:[#allocation10 + $0x30] sm:$0xff] %v1777_v31  ;;  %1792 = vrcp.f32 %v1099_v30 }
 0x5e6   :  { %v1781_v38 = vpop.eup %1780  ;;  %1144 = vst [vmem:[#allocation10 + $0x48] sm:$0xff] %v1779_v37 }
 0x5e7   :  { %v1783_v39 = vpop.eup %1782  ;;  %v1102_v40 = vadd.f32 1.0, %v1781_v38 }
 0x5e8   :  { %v1785_v41 = vpop.eup %1784  ;;  %v1101_v42 = vadd.f32 1.0, %v1783_v39 }
 0x5e9   :  { %v1787_v43 = vpop.eup %1786  ;;  %1143 = vst [vmem:[#allocation10 + $0x40] sm:$0xff] %v1785_v41  ;;  %1794 = vrcp.f32 %v1102_v40 }
 0x5ea   :  { %1146 = vst [vmem:[#allocation10 + $0x58] sm:$0xff] %v1787_v43  ;;  %1796 = vrcp.f32 %v1101_v42 }
 0x5ec   :  { %v1789_v44 = vpop.eup %1788 }
 0x5ed   :  { %v1791_v45 = vpop.eup %1790  ;;  %1145 = vst [vmem:[#allocation10 + $0x50] sm:$0xff] %v1789_v44 }
 0x5ee   :  { %1148 = vst [vmem:[#allocation10 + $0x68] sm:$0xff] %v1791_v45 }
 0x5ef   :  { %v1793_v46 = vpop.eup %1792 }
 0x5f0   :  { %1147 = vst [vmem:[#allocation10 + $0x60] sm:$0xff] %v1793_v46 }
 0x5f3   :  { %v1795_v47 = vpop.eup %1794 }
 0x5f4   :  { %v1797_v48 = vpop.eup %1796  ;;  %1150 = vst [vmem:[#allocation10 + $0x78] sm:$0xff] %v1795_v47 }
 0x5f5   :  { %1149 = vst [vmem:[#allocation10 + $0x70] sm:$0xff] %v1797_v48 }
 0x5f6   :  { %1897 = shalt.err (!%p1894_p8)
}
 0x5f7   :  { %s1898_s15 = scalar_lea.hbm %s2124_s4, 2048 }
 0x5f8   :  { %p1899_p9 = scmp.ne.s32.totalorder %s2124_s4, %s1898_s15  ;;  %p1902_p10 = scmp.lt.u32.totalorder %s1898_s15, %s2124_s4 }
 0x5fa   :  { %p1904_p11 = pnand %p1902_p10, %p1899_p9 }
 0x5fc   :  { %1907 = shalt.err (!%p1904_p11)
}
 0x5fd   :  { %1162 = dma.vmem_to_hbm [thread:$0]  %s1157_s12, 2048, %s2124_s4, [#allocation4], %s1921_s0, %s1921_s0, %s1922_s18  }
 0x5fe   :  { %1914 = dma.done.wait [#allocation4], 2048  }
 0x5ff   :  { %1915 = vsyncadd [#allocation4], 4294965248 }
 0x600   :  { %1166 = vsyncpa [#allocation3], 1 }
 0x601   :  { %1167 = vsyncpa [#allocation6], 1 }
 0x602   :  { %1168 = vsyncpa [#allocation9], 1 }
 0x603   :  { %1169 = vsyncpa [#allocation4], 1 }

</bundles_post_ra>
